<compile_context>
chip_gen: v7x
topology: tpu7x:2x2x1
jax: 0.10.0
libtpu: 0.0.40
codegen_flags: <defaults>
</compile_context>

<pallas_src>
import jax
import jax.numpy as jnp
from jax.experimental import pallas as pl
from jax.experimental.pallas import tpu as pltpu


# ---------------------------------------------------------------------------
# Kernel
# ---------------------------------------------------------------------------
def _tri_modal_kernel(x1_ref, x2_ref, x3_ref,
                      qw_h, qb_h, kvw_h, kvb_h, ow_h, ob_h,
                      g_ref,
                      qw_s, qb_s, kvw_s, kvb_s, ow_s, ob_s):
    Bt, S, D = x1_ref.shape

    # Single-copy weight residency: DMA HBM -> VMEM scratch once, at step 0.
    @pl.when(pl.program_id(0) == 0)
    def _load_weights():
        pltpu.sync_copy(qw_h, qw_s)
        pltpu.sync_copy(qb_h, qb_s)
        pltpu.sync_copy(kvw_h, kvw_s)
        pltpu.sync_copy(kvb_h, kvb_s)
        pltpu.sync_copy(ow_h, ow_s)
        pltpu.sync_copy(ob_h, ob_s)

    # Flatten the batch tile into the matmul M dimension: (Bt*S, D).
    x1 = x1_ref[...].reshape(Bt * S, D)
    x2 = x2_ref[...].reshape(Bt * S, D)
    x3 = x3_ref[...].reshape(Bt * S, D)

    def path(xq, xkv, pi):
        # q projection; 1/sqrt(D) already folded into qw_s/qb_s by the wrapper.
        q = jnp.dot(xq, qw_s[pi], preferred_element_type=jnp.float32) + qb_s[pi]
        # Fused k/v projection: one (D, 2D) MXU pass over the kv activations.
        kv = jnp.dot(xkv, kvw_s[pi], preferred_element_type=jnp.float32) + kvb_s[pi]
        k = kv[:, :D]
        v = kv[:, D:]

        qb3 = q.reshape(Bt, S, D)
        kb3 = k.reshape(Bt, S, D)
        vb3 = v.reshape(Bt, S, D)

        # Attention scores: contraction over d, no materialized k transpose.
        s = jnp.einsum("bqd,bkd->bqk", qb3, kb3,
                       preferred_element_type=jnp.float32)
        m = jnp.max(s, axis=-1, keepdims=True)
        e = jnp.exp(s - m)                       # f32 on all generations
        denom = jnp.sum(e, axis=-1, keepdims=True)
        # TODO(synk): nn.Dropout(0.1) on attention weights omitted (eval mode).
        ctx = jnp.einsum("bqk,bkd->bqd", e, vb3,
                         preferred_element_type=jnp.float32)
        # Normalize the (S, D) PV result, not the (S, S) weight matrix.
        # approx reciprocal (EUP slot) + one Newton step keeps ~f32 accuracy.
        inv = pl.reciprocal(denom, approx=True)
        inv = inv * (2.0 - denom * inv)
        ctx = (ctx * inv).reshape(Bt * S, D)

        # cat((x, ctx), -1) @ W_o == x @ W_o[:D] + ctx @ W_o[D:]
        y = (jnp.dot(xq, ow_s[pi, :D, :], preferred_element_type=jnp.float32)
             + jnp.dot(ctx, ow_s[pi, D:, :], preferred_element_type=jnp.float32)
             + ob_s[pi])
        # Single, full-block-aligned store per path (no duplicate writes).
        g_ref[:, pi, :, :] = y.reshape(Bt, S, D).astype(g_ref.dtype)

    path(x1, x2, 0)   # x1 queries attend to x2
    path(x2, x3, 1)   # x2 queries attend to x3
    path(x3, x1, 2)   # x3 queries attend to x1


# ---------------------------------------------------------------------------
# Sizing helpers
# ---------------------------------------------------------------------------
def _round_up(x, m):
    return (x + m - 1) // m * m


def _padded_elems(*dims):
    # (8, 128) tiling of the last two dims.
    *lead, r, c = dims
    n = 1
    for d in lead:
        n *= d
    return n * _round_up(r, 8) * _round_up(c, 128)


def _vmem_capacity_bytes():
    # Hardware query only (never masks kernel compile errors).
    try:
        cap = int(getattr(pltpu.get_tpu_info(), "vmem_capacity_bytes", 0))
        if cap > 0:
            return cap
    except Exception:
        pass
    return 64 << 20  # conservative: v7x per-TensorCore capacity


def _step_act_bytes(bt, S, D, act_isz):
    # Double-buffered input/output blocks + live f32 temps (paths sequential).
    io = (3 * 2 * bt * S * D + 2 * bt * 3 * S * D) * act_isz
    live = (14 * bt * S * D + bt * S * S) * 4
    return io + live


def _pick_block_batch(B, S, D, act_isz, act_budget):
    """Largest batch tile whose working set fits the activation budget,
    stopping once the matmul M dimension (Bt*S) reaches ~1024 rows."""
    bt = 1
    for cand in range(1, B + 1):
        if _step_act_bytes(cand, S, D, act_isz) > act_budget:
            break
        bt = cand
        if cand * S >= 1024:
            break
    return bt


# ---------------------------------------------------------------------------
# Wrapper
# ---------------------------------------------------------------------------
def _prepare_params(params, D):
    """Restack PyTorch-style params into per-path kernel layout."""
    pw, pb, ow, ob = params               # (9,D,D), (9,1,D), (3,2D,D), (3,1,D)
    scale = 1.0 / (D ** 0.5)
    # pw stacking: [q1,k1,v1, q2,k2,v2, q3,k3,v3]
    q_idx = jnp.array([0, 3, 6])          # query weights per path
    k_idx = jnp.array([4, 7, 1])          # kv-source key weights per path
    v_idx = jnp.array([5, 8, 2])          # kv-source value weights per path
    qw = pw[q_idx] * scale                # fold 1/sqrt(D) into q weights
    qb = pb[q_idx] * scale                # ...and bias
    kvw = jnp.concatenate([pw[k_idx], pw[v_idx]], axis=-1)   # (3, D, 2D)
    kvb = jnp.concatenate([pb[k_idx], pb[v_idx]], axis=-1)   # (3, 1, 2D)
    return qw, qb, kvw, kvb, ow, ob


def tri_modal_cross_attention(x1, x2, x3, params):
    """Returns (output1, output2, output3, global_feature)."""
    B, S, D = x1.shape
    out_dtype = x1.dtype
    qw, qb, kvw, kvb, ow, ob = _prepare_params(params, D)

    act_isz = jnp.dtype(x1.dtype).itemsize
    w_isz = jnp.dtype(qw.dtype).itemsize
    cap = _vmem_capacity_bytes()

    weight_bytes = (_padded_elems(3, D, D) + _padded_elems(3, D, 2 * D)
                    + _padded_elems(3, 2 * D, D) + 2 * _padded_elems(3, 1, D)
                    + _padded_elems(3, 1, 2 * D)) * w_isz
    act_budget = max(4 << 20, int(cap * 0.80) - weight_bytes)
    Bt = _pick_block_batch(B, S, D, act_isz, act_budget)

    # Ragged batch handling: pad B up to a multiple of Bt.
    G = pl.cdiv(B, Bt)
    B_pad = G * Bt
    if B_pad != B:
        pad = ((0, B_pad - B), (0, 0), (0, 0))
        x1 = jnp.pad(x1, pad)
        x2 = jnp.pad(x2, pad)
        x3 = jnp.pad(x3, pad)

    est = (weight_bytes + _step_act_bytes(Bt, S, D, act_isz)) * 5 // 4
    vmem_limit = int(min(cap * 0.85, max(32 << 20, est)))

    act_in = pl.BlockSpec((Bt, S, D), lambda b: (b, 0, 0))
    glob = pl.pallas_call(
        _tri_modal_kernel,
        grid=(G,),
        out_shape=jax.ShapeDtypeStruct((B_pad, 3, S, D), out_dtype),
        in_specs=[act_in, act_in, act_in]
        + [pl.BlockSpec(memory_space=pl.ANY)] * 6,
        out_specs=pl.BlockSpec((Bt, 3, S, D), lambda b: (b, 0, 0, 0)),
        scratch_shapes=[
            pltpu.VMEM((3, D, D), qw.dtype),
            pltpu.VMEM((3, 1, D), qb.dtype),
            pltpu.VMEM((3, D, 2 * D), kvw.dtype),
            pltpu.VMEM((3, 1, 2 * D), kvb.dtype),
            pltpu.VMEM((3, 2 * D, D), ow.dtype),
            pltpu.VMEM((3, 1, D), ob.dtype),
        ],
        compiler_params=pltpu.CompilerParams(
            # "arbitrary": sequential grid so the step-0 weight DMA is seen by
            # every step; multi-TC parallelism is left to outer sharding.
            dimension_semantics=("arbitrary",),
            vmem_limit_bytes=vmem_limit),
    )(x1, x2, x3, qw, qb, kvw, kvb, ow, ob)

    glob = glob[:B]                                   # drop padded batch rows
    o1, o2, o3 = glob[:, 0], glob[:, 1], glob[:, 2]
    global_feature = glob.reshape(B, 3 * S, D)        # free reshape of (B,3,S,D)
    return o1, o2, o3, global_feature


# ---------------------------------------------------------------------------
# Reference + test harness
# ---------------------------------------------------------------------------
def _reference(x1, x2, x3, params):
    pw, pb, ow, ob = params
    D = x1.shape[-1]
    scale = 1.0 / (D ** 0.5)

    def lin(x, i):
        return x @ pw[i] + pb[i]

    q1, k1, v1 = lin(x1, 0), lin(x1, 1), lin(x1, 2)
    q2, k2, v2 = lin(x2, 3), lin(x2, 4), lin(x2, 5)
    q3, k3, v3 = lin(x3, 6), lin(x3, 7), lin(x3, 8)

    def attend(q, k, v):
        s = jnp.einsum("bqd,bkd->bqk", q, k) * scale
        w = jax.nn.softmax(s, axis=-1)
        return jnp.einsum("bqk,bkd->bqd", w, v)

    c1, c2, c3 = attend(q1, k2, v2), attend(q2, k3, v3), attend(q3, k1, v1)

    def out_proj(x, c, i):
        return jnp.concatenate([x, c], -1) @ ow[i] + ob[i]

    o1, o2, o3 = out_proj(x1, c1, 0), out_proj(x2, c2, 1), out_proj(x3, c3, 2)
    return o1, o2, o3, jnp.concatenate([o1, o2, o3], axis=1)


def _init_params(key, D):
    # Deterministic synthetic init (PyTorch-style uniform(-1/sqrt(fan_in), ...)).
    k1, k2, k3, k4 = jax.random.split(key, 4)
    lim_p = 1.0 / (D ** 0.5)
    lim_o = 1.0 / ((2 * D) ** 0.5)
    pw = jax.random.uniform(k1, (9, D, D), jnp.float32, -lim_p, lim_p)
    pb = jax.random.uniform(k2, (9, 1, D), jnp.float32, -lim_p, lim_p)
    ow = jax.random.uniform(k3, (3, 2 * D, D), jnp.float32, -lim_o, lim_o)
    ob = jax.random.uniform(k4, (3, 1, D), jnp.float32, -lim_o, lim_o)
    return pw, pb, ow, ob


if __name__ == "__main__":
    B, S, D = 2, 8, 32
    key = jax.random.PRNGKey(0)
    kx1, kx2, kx3, kp = jax.random.split(key, 4)
    x1 = jax.random.normal(kx1, (B, S, D), jnp.float32)
    x2 = jax.random.normal(kx2, (B, S, D), jnp.float32)
    x3 = jax.random.normal(kx3, (B, S, D), jnp.float32)
    params = _init_params(kp, D)

    outs = jax.block_until_ready(tri_modal_cross_attention(x1, x2, x3, params))
    refs = _reference(x1, x2, x3, params)

    for o, r in zip(outs, refs):
        assert o.shape == r.shape, (o.shape, r.shape)
        assert jnp.allclose(o, r, atol=1e-4, rtol=1e-4), float(jnp.max(jnp.abs(o - r)))

    print("KERNEL_OK")
</pallas_src>

<mosaic_0001>
module attributes {stable_mosaic.version = 11 : i64} {
  func.func @_tri_modal_kernel(%arg0: i32, %arg1: memref<2x8x32xf32, #tpu.memory_space<vmem>>, %arg2: memref<2x8x32xf32, #tpu.memory_space<vmem>>, %arg3: memref<2x8x32xf32, #tpu.memory_space<vmem>>, %arg4: memref<3x32x32xf32, #tpu.memory_space<any>>, %arg5: memref<3x1x32xf32, #tpu.memory_space<any>>, %arg6: memref<3x32x64xf32, #tpu.memory_space<any>>, %arg7: memref<3x1x64xf32, #tpu.memory_space<any>>, %arg8: memref<3x64x32xf32, #tpu.memory_space<any>>, %arg9: memref<3x1x32xf32, #tpu.memory_space<any>>, %arg10: memref<2x3x8x32xf32, #tpu.memory_space<vmem>>, %arg11: memref<3x32x32xf32, #tpu.memory_space<vmem>>, %arg12: memref<3x1x32xf32, #tpu.memory_space<vmem>>, %arg13: memref<3x32x64xf32, #tpu.memory_space<vmem>>, %arg14: memref<3x1x64xf32, #tpu.memory_space<vmem>>, %arg15: memref<3x64x32xf32, #tpu.memory_space<vmem>>, %arg16: memref<3x1x32xf32, #tpu.memory_space<vmem>>) attributes {dimension_semantics = [#tpu.dimension_semantics<arbitrary>], iteration_bounds = array<i64: 1>, scalar_prefetch = 0 : i64, scratch_operands = 6 : i64, tpu.core_type = #tpu.core_type<tc>, window_params = [{transform_indices = @transform_0, window_bounds = array<i64: 2, 8, 32>}, {transform_indices = @transform_1, window_bounds = array<i64: 2, 8, 32>}, {transform_indices = @transform_2, window_bounds = array<i64: 2, 8, 32>}, {}, {}, {}, {}, {}, {}, {transform_indices = @transform_9, window_bounds = array<i64: 2, 3, 8, 32>}]} {
    %c0_i32 = arith.constant 0 : i32
    %0 = arith.cmpi eq, %arg0, %c0_i32 : i32
    %1 = arith.extui %0 : i1 to i32
    %c0_i32_0 = arith.constant 0 : i32
    %2 = arith.cmpi ne, %1, %c0_i32_0 : i32
    scf.if %2 {
      "tpu.region"() ({
        %162 = tpu.sem_alloc : memref<!tpu.dma_semaphore, #tpu.memory_space<semaphore_mem>>
        tpu.enqueue_dma source(%arg4 : memref<3x32x32xf32, #tpu.memory_space<any>>) target(%arg11 : memref<3x32x32xf32, #tpu.memory_space<vmem>>) target_semaphore(%162 : memref<!tpu.dma_semaphore, #tpu.memory_space<semaphore_mem>>)
        tpu.wait_dma2 semaphore(%162 : memref<!tpu.dma_semaphore, #tpu.memory_space<semaphore_mem>>) src(%arg4 : memref<3x32x32xf32, #tpu.memory_space<any>>) dst(%arg11 : memref<3x32x32xf32, #tpu.memory_space<vmem>>)
        tpu.yield
      }) : () -> ()
      "tpu.region"() ({
        %162 = tpu.sem_alloc : memref<!tpu.dma_semaphore, #tpu.memory_space<semaphore_mem>>
        tpu.enqueue_dma source(%arg5 : memref<3x1x32xf32, #tpu.memory_space<any>>) target(%arg12 : memref<3x1x32xf32, #tpu.memory_space<vmem>>) target_semaphore(%162 : memref<!tpu.dma_semaphore, #tpu.memory_space<semaphore_mem>>)
        tpu.wait_dma2 semaphore(%162 : memref<!tpu.dma_semaphore, #tpu.memory_space<semaphore_mem>>) src(%arg5 : memref<3x1x32xf32, #tpu.memory_space<any>>) dst(%arg12 : memref<3x1x32xf32, #tpu.memory_space<vmem>>)
        tpu.yield
      }) : () -> ()
      "tpu.region"() ({
        %162 = tpu.sem_alloc : memref<!tpu.dma_semaphore, #tpu.memory_space<semaphore_mem>>
        tpu.enqueue_dma source(%arg6 : memref<3x32x64xf32, #tpu.memory_space<any>>) target(%arg13 : memref<3x32x64xf32, #tpu.memory_space<vmem>>) target_semaphore(%162 : memref<!tpu.dma_semaphore, #tpu.memory_space<semaphore_mem>>)
        tpu.wait_dma2 semaphore(%162 : memref<!tpu.dma_semaphore, #tpu.memory_space<semaphore_mem>>) src(%arg6 : memref<3x32x64xf32, #tpu.memory_space<any>>) dst(%arg13 : memref<3x32x64xf32, #tpu.memory_space<vmem>>)
        tpu.yield
      }) : () -> ()
      "tpu.region"() ({
        %162 = tpu.sem_alloc : memref<!tpu.dma_semaphore, #tpu.memory_space<semaphore_mem>>
        tpu.enqueue_dma source(%arg7 : memref<3x1x64xf32, #tpu.memory_space<any>>) target(%arg14 : memref<3x1x64xf32, #tpu.memory_space<vmem>>) target_semaphore(%162 : memref<!tpu.dma_semaphore, #tpu.memory_space<semaphore_mem>>)
        tpu.wait_dma2 semaphore(%162 : memref<!tpu.dma_semaphore, #tpu.memory_space<semaphore_mem>>) src(%arg7 : memref<3x1x64xf32, #tpu.memory_space<any>>) dst(%arg14 : memref<3x1x64xf32, #tpu.memory_space<vmem>>)
        tpu.yield
      }) : () -> ()
      "tpu.region"() ({
        %162 = tpu.sem_alloc : memref<!tpu.dma_semaphore, #tpu.memory_space<semaphore_mem>>
        tpu.enqueue_dma source(%arg8 : memref<3x64x32xf32, #tpu.memory_space<any>>) target(%arg15 : memref<3x64x32xf32, #tpu.memory_space<vmem>>) target_semaphore(%162 : memref<!tpu.dma_semaphore, #tpu.memory_space<semaphore_mem>>)
        tpu.wait_dma2 semaphore(%162 : memref<!tpu.dma_semaphore, #tpu.memory_space<semaphore_mem>>) src(%arg8 : memref<3x64x32xf32, #tpu.memory_space<any>>) dst(%arg15 : memref<3x64x32xf32, #tpu.memory_space<vmem>>)
        tpu.yield
      }) : () -> ()
      "tpu.region"() ({
        %162 = tpu.sem_alloc : memref<!tpu.dma_semaphore, #tpu.memory_space<semaphore_mem>>
        tpu.enqueue_dma source(%arg9 : memref<3x1x32xf32, #tpu.memory_space<any>>) target(%arg16 : memref<3x1x32xf32, #tpu.memory_space<vmem>>) target_semaphore(%162 : memref<!tpu.dma_semaphore, #tpu.memory_space<semaphore_mem>>)
        tpu.wait_dma2 semaphore(%162 : memref<!tpu.dma_semaphore, #tpu.memory_space<semaphore_mem>>) src(%arg9 : memref<3x1x32xf32, #tpu.memory_space<any>>) dst(%arg16 : memref<3x1x32xf32, #tpu.memory_space<vmem>>)
        tpu.yield
      }) : () -> ()
    } else {
    }
    %c0 = arith.constant 0 : index
    %c0_1 = arith.constant 0 : index
    %c0_2 = arith.constant 0 : index
    %3 = vector.load %arg1[%c0, %c0_1, %c0_2] : memref<2x8x32xf32, #tpu.memory_space<vmem>>, vector<2x8x32xf32>
    %4 = vector.shape_cast %3 : vector<2x8x32xf32> to vector<16x32xf32>
    %c0_3 = arith.constant 0 : index
    %c0_4 = arith.constant 0 : index
    %c0_5 = arith.constant 0 : index
    %5 = vector.load %arg2[%c0_3, %c0_4, %c0_5] : memref<2x8x32xf32, #tpu.memory_space<vmem>>, vector<2x8x32xf32>
    %6 = vector.shape_cast %5 : vector<2x8x32xf32> to vector<16x32xf32>
    %c0_6 = arith.constant 0 : index
    %c0_7 = arith.constant 0 : index
    %c0_8 = arith.constant 0 : index
    %7 = vector.load %arg3[%c0_6, %c0_7, %c0_8] : memref<2x8x32xf32, #tpu.memory_space<vmem>>, vector<2x8x32xf32>
    %8 = vector.shape_cast %7 : vector<2x8x32xf32> to vector<16x32xf32>
    %c0_9 = arith.constant 0 : index
    %c0_10 = arith.constant 0 : index
    %c0_11 = arith.constant 0 : index
    %9 = vector.load %arg11[%c0_9, %c0_10, %c0_11] : memref<3x32x32xf32, #tpu.memory_space<vmem>>, vector<1x32x32xf32>
    %10 = vector.shape_cast %9 : vector<1x32x32xf32> to vector<32x32xf32>
    %cst = arith.constant dense<0.000000e+00> : vector<16x32xf32>
    %11 = tpu.matmul %4, %10, %cst {dimension_numbers = #tpu.dot_dimension_numbers<[1], [0], [0], [1], [0, 0, 1, 1], [], []>} : vector<16x32xf32>, vector<32x32xf32>, vector<16x32xf32> -> vector<16x32xf32>
    %c0_12 = arith.constant 0 : index
    %c0_13 = arith.constant 0 : index
    %c0_14 = arith.constant 0 : index
    %12 = vector.load %arg12[%c0_12, %c0_13, %c0_14] : memref<3x1x32xf32, #tpu.memory_space<vmem>>, vector<1x1x32xf32>
    %13 = vector.shape_cast %12 : vector<1x1x32xf32> to vector<1x32xf32>
    %14 = vector.broadcast %13 : vector<1x32xf32> to vector<16x32xf32>
    %15 = arith.addf %11, %14 : vector<16x32xf32>
    %c0_15 = arith.constant 0 : index
    %c0_16 = arith.constant 0 : index
    %c0_17 = arith.constant 0 : index
    %16 = vector.load %arg13[%c0_15, %c0_16, %c0_17] : memref<3x32x64xf32, #tpu.memory_space<vmem>>, vector<1x32x64xf32>
    %17 = vector.shape_cast %16 : vector<1x32x64xf32> to vector<32x64xf32>
    %cst_18 = arith.constant dense<0.000000e+00> : vector<16x64xf32>
    %18 = tpu.matmul %6, %17, %cst_18 {dimension_numbers = #tpu.dot_dimension_numbers<[1], [0], [0], [1], [0, 0, 1, 1], [], []>} : vector<16x32xf32>, vector<32x64xf32>, vector<16x64xf32> -> vector<16x64xf32>
    %c0_19 = arith.constant 0 : index
    %c0_20 = arith.constant 0 : index
    %c0_21 = arith.constant 0 : index
    %19 = vector.load %arg14[%c0_19, %c0_20, %c0_21] : memref<3x1x64xf32, #tpu.memory_space<vmem>>, vector<1x1x64xf32>
    %20 = vector.shape_cast %19 : vector<1x1x64xf32> to vector<1x64xf32>
    %21 = vector.broadcast %20 : vector<1x64xf32> to vector<16x64xf32>
    %22 = arith.addf %18, %21 : vector<16x64xf32>
    %23 = vector.extract_strided_slice %22 {offsets = [0, 0], sizes = [16, 32], strides = [1, 1]} : vector<16x64xf32> to vector<16x32xf32>
    %24 = vector.extract_strided_slice %22 {offsets = [0, 32], sizes = [16, 32], strides = [1, 1]} : vector<16x64xf32> to vector<16x32xf32>
    %25 = vector.shape_cast %15 : vector<16x32xf32> to vector<2x8x32xf32>
    %26 = vector.shape_cast %23 : vector<16x32xf32> to vector<2x8x32xf32>
    %27 = vector.shape_cast %24 : vector<16x32xf32> to vector<2x8x32xf32>
    "tpu.trace_start"() <{level = 10 : i32, message = "bqd,bkd->bqk"}> : () -> ()
    %cst_22 = arith.constant dense<0.000000e+00> : vector<2x8x8xf32>
    %28 = tpu.matmul %25, %26, %cst_22 {dimension_numbers = #tpu.dot_dimension_numbers<[2], [2], [1], [1], [0, 0, 0, 1, 1, 1], [0], [0]>} : vector<2x8x32xf32>, vector<2x8x32xf32>, vector<2x8x8xf32> -> vector<2x8x8xf32>
    "tpu.trace_stop"() : () -> ()
    %cst_23 = arith.constant dense<0xFF800000> : vector<2x8xf32>
    %29 = vector.multi_reduction <maximumf>, %28, %cst_23 [2] : vector<2x8x8xf32> to vector<2x8xf32>
    %30 = vector.shape_cast %29 : vector<2x8xf32> to vector<2x8x1xf32>
    %31 = vector.broadcast %30 : vector<2x8x1xf32> to vector<2x8x8xf32>
    %32 = arith.subf %28, %31 : vector<2x8x8xf32>
    %33 = math.exp %32 : vector<2x8x8xf32>
    %cst_24 = arith.constant dense<0.000000e+00> : vector<2x8xf32>
    %34 = vector.multi_reduction <add>, %33, %cst_24 [2] : vector<2x8x8xf32> to vector<2x8xf32>
    %35 = vector.shape_cast %34 : vector<2x8xf32> to vector<2x8x1xf32>
    "tpu.trace_start"() <{level = 10 : i32, message = "bqk,bkd->bqd"}> : () -> ()
    %cst_25 = arith.constant dense<0.000000e+00> : vector<2x8x32xf32>
    %36 = tpu.matmul %33, %27, %cst_25 {dimension_numbers = #tpu.dot_dimension_numbers<[2], [1], [1], [2], [0, 0, 0, 1, 1, 2], [0], [0]>} : vector<2x8x8xf32>, vector<2x8x32xf32>, vector<2x8x32xf32> -> vector<2x8x32xf32>
    "tpu.trace_stop"() : () -> ()
    %37 = tpu.reciprocal %35 {approx = true} : vector<2x8x1xf32> -> vector<2x8x1xf32>
    %38 = arith.mulf %35, %37 : vector<2x8x1xf32>
    %cst_26 = arith.constant 2.000000e+00 : f32
    %39 = vector.broadcast %cst_26 : f32 to vector<2x8x1xf32>
    %40 = arith.subf %39, %38 : vector<2x8x1xf32>
    %41 = arith.mulf %37, %40 : vector<2x8x1xf32>
    %42 = vector.broadcast %41 : vector<2x8x1xf32> to vector<2x8x32xf32>
    %43 = arith.mulf %36, %42 : vector<2x8x32xf32>
    %44 = vector.shape_cast %43 : vector<2x8x32xf32> to vector<16x32xf32>
    %c0_27 = arith.constant 0 : index
    %c0_28 = arith.constant 0 : index
    %c0_29 = arith.constant 0 : index
    %45 = vector.load %arg15[%c0_27, %c0_28, %c0_29] : memref<3x64x32xf32, #tpu.memory_space<vmem>>, vector<1x32x32xf32>
    %46 = vector.shape_cast %45 : vector<1x32x32xf32> to vector<32x32xf32>
    %cst_30 = arith.constant dense<0.000000e+00> : vector<16x32xf32>
    %47 = tpu.matmul %4, %46, %cst_30 {dimension_numbers = #tpu.dot_dimension_numbers<[1], [0], [0], [1], [0, 0, 1, 1], [], []>} : vector<16x32xf32>, vector<32x32xf32>, vector<16x32xf32> -> vector<16x32xf32>
    %c0_31 = arith.constant 0 : index
    %c32 = arith.constant 32 : index
    %c0_32 = arith.constant 0 : index
    %48 = vector.load %arg15[%c0_31, %c32, %c0_32] : memref<3x64x32xf32, #tpu.memory_space<vmem>>, vector<1x32x32xf32>
    %49 = vector.shape_cast %48 : vector<1x32x32xf32> to vector<32x32xf32>
    %cst_33 = arith.constant dense<0.000000e+00> : vector<16x32xf32>
    %50 = tpu.matmul %44, %49, %cst_33 {dimension_numbers = #tpu.dot_dimension_numbers<[1], [0], [0], [1], [0, 0, 1, 1], [], []>} : vector<16x32xf32>, vector<32x32xf32>, vector<16x32xf32> -> vector<16x32xf32>
    %51 = arith.addf %47, %50 : vector<16x32xf32>
    %c0_34 = arith.constant 0 : index
    %c0_35 = arith.constant 0 : index
    %c0_36 = arith.constant 0 : index
    %52 = vector.load %arg16[%c0_34, %c0_35, %c0_36] : memref<3x1x32xf32, #tpu.memory_space<vmem>>, vector<1x1x32xf32>
    %53 = vector.shape_cast %52 : vector<1x1x32xf32> to vector<1x32xf32>
    %54 = vector.broadcast %53 : vector<1x32xf32> to vector<16x32xf32>
    %55 = arith.addf %51, %54 : vector<16x32xf32>
    %56 = vector.shape_cast %55 : vector<16x32xf32> to vector<2x8x32xf32>
    %c0_37 = arith.constant 0 : index
    %c0_38 = arith.constant 0 : index
    %c0_39 = arith.constant 0 : index
    %c0_40 = arith.constant 0 : index
    %57 = vector.load %arg10[%c0_37, %c0_38, %c0_39, %c0_40] : memref<2x3x8x32xf32, #tpu.memory_space<vmem>>, vector<2x1x8x32xf32>
    %58 = vector.shape_cast %57 : vector<2x1x8x32xf32> to vector<2x8x32xf32>
    %59 = vector.shape_cast %56 : vector<2x8x32xf32> to vector<2x1x8x32xf32>
    tpu.vector_store %arg10[%c0_37, %c0_38, %c0_39, %c0_40], %59 {strides = array<i32>} : memref<2x3x8x32xf32, #tpu.memory_space<vmem>>, vector<2x1x8x32xf32>,
    %c1 = arith.constant 1 : index
    %c0_41 = arith.constant 0 : index
    %c0_42 = arith.constant 0 : index
    %60 = vector.load %arg11[%c1, %c0_41, %c0_42] : memref<3x32x32xf32, #tpu.memory_space<vmem>>, vector<1x32x32xf32>
    %61 = vector.shape_cast %60 : vector<1x32x32xf32> to vector<32x32xf32>
    %cst_43 = arith.constant dense<0.000000e+00> : vector<16x32xf32>
    %62 = tpu.matmul %6, %61, %cst_43 {dimension_numbers = #tpu.dot_dimension_numbers<[1], [0], [0], [1], [0, 0, 1, 1], [], []>} : vector<16x32xf32>, vector<32x32xf32>, vector<16x32xf32> -> vector<16x32xf32>
    %c1_44 = arith.constant 1 : index
    %c0_45 = arith.constant 0 : index
    %c0_46 = arith.constant 0 : index
    %63 = vector.load %arg12[%c1_44, %c0_45, %c0_46] : memref<3x1x32xf32, #tpu.memory_space<vmem>>, vector<1x1x32xf32>
    %64 = vector.shape_cast %63 : vector<1x1x32xf32> to vector<1x32xf32>
    %65 = vector.broadcast %64 : vector<1x32xf32> to vector<16x32xf32>
    %66 = arith.addf %62, %65 : vector<16x32xf32>
    %c1_47 = arith.constant 1 : index
    %c0_48 = arith.constant 0 : index
    %c0_49 = arith.constant 0 : index
    %67 = vector.load %arg13[%c1_47, %c0_48, %c0_49] : memref<3x32x64xf32, #tpu.memory_space<vmem>>, vector<1x32x64xf32>
    %68 = vector.shape_cast %67 : vector<1x32x64xf32> to vector<32x64xf32>
    %cst_50 = arith.constant dense<0.000000e+00> : vector<16x64xf32>
    %69 = tpu.matmul %8, %68, %cst_50 {dimension_numbers = #tpu.dot_dimension_numbers<[1], [0], [0], [1], [0, 0, 1, 1], [], []>} : vector<16x32xf32>, vector<32x64xf32>, vector<16x64xf32> -> vector<16x64xf32>
    %c1_51 = arith.constant 1 : index
    %c0_52 = arith.constant 0 : index
    %c0_53 = arith.constant 0 : index
    %70 = vector.load %arg14[%c1_51, %c0_52, %c0_53] : memref<3x1x64xf32, #tpu.memory_space<vmem>>, vector<1x1x64xf32>
    %71 = vector.shape_cast %70 : vector<1x1x64xf32> to vector<1x64xf32>
    %72 = vector.broadcast %71 : vector<1x64xf32> to vector<16x64xf32>
    %73 = arith.addf %69, %72 : vector<16x64xf32>
    %74 = vector.extract_strided_slice %73 {offsets = [0, 0], sizes = [16, 32], strides = [1, 1]} : vector<16x64xf32> to vector<16x32xf32>
    %75 = vector.extract_strided_slice %73 {offsets = [0, 32], sizes = [16, 32], strides = [1, 1]} : vector<16x64xf32> to vector<16x32xf32>
    %76 = vector.shape_cast %66 : vector<16x32xf32> to vector<2x8x32xf32>
    %77 = vector.shape_cast %74 : vector<16x32xf32> to vector<2x8x32xf32>
    %78 = vector.shape_cast %75 : vector<16x32xf32> to vector<2x8x32xf32>
    "tpu.trace_start"() <{level = 10 : i32, message = "bqd,bkd->bqk"}> : () -> ()
    %cst_54 = arith.constant dense<0.000000e+00> : vector<2x8x8xf32>
    %79 = tpu.matmul %76, %77, %cst_54 {dimension_numbers = #tpu.dot_dimension_numbers<[2], [2], [1], [1], [0, 0, 0, 1, 1, 1], [0], [0]>} : vector<2x8x32xf32>, vector<2x8x32xf32>, vector<2x8x8xf32> -> vector<2x8x8xf32>
    "tpu.trace_stop"() : () -> ()
    %cst_55 = arith.constant dense<0xFF800000> : vector<2x8xf32>
    %80 = vector.multi_reduction <maximumf>, %79, %cst_55 [2] : vector<2x8x8xf32> to vector<2x8xf32>
    %81 = vector.shape_cast %80 : vector<2x8xf32> to vector<2x8x1xf32>
    %82 = vector.broadcast %81 : vector<2x8x1xf32> to vector<2x8x8xf32>
    %83 = arith.subf %79, %82 : vector<2x8x8xf32>
    %84 = math.exp %83 : vector<2x8x8xf32>
    %cst_56 = arith.constant dense<0.000000e+00> : vector<2x8xf32>
    %85 = vector.multi_reduction <add>, %84, %cst_56 [2] : vector<2x8x8xf32> to vector<2x8xf32>
    %86 = vector.shape_cast %85 : vector<2x8xf32> to vector<2x8x1xf32>
    "tpu.trace_start"() <{level = 10 : i32, message = "bqk,bkd->bqd"}> : () -> ()
    %cst_57 = arith.constant dense<0.000000e+00> : vector<2x8x32xf32>
    %87 = tpu.matmul %84, %78, %cst_57 {dimension_numbers = #tpu.dot_dimension_numbers<[2], [1], [1], [2], [0, 0, 0, 1, 1, 2], [0], [0]>} : vector<2x8x8xf32>, vector<2x8x32xf32>, vector<2x8x32xf32> -> vector<2x8x32xf32>
    "tpu.trace_stop"() : () -> ()
    %88 = tpu.reciprocal %86 {approx = true} : vector<2x8x1xf32> -> vector<2x8x1xf32>
    %89 = arith.mulf %86, %88 : vector<2x8x1xf32>
    %cst_58 = arith.constant 2.000000e+00 : f32
    %90 = vector.broadcast %cst_58 : f32 to vector<2x8x1xf32>
    %91 = arith.subf %90, %89 : vector<2x8x1xf32>
    %92 = arith.mulf %88, %91 : vector<2x8x1xf32>
    %93 = vector.broadcast %92 : vector<2x8x1xf32> to vector<2x8x32xf32>
    %94 = arith.mulf %87, %93 : vector<2x8x32xf32>
    %95 = vector.shape_cast %94 : vector<2x8x32xf32> to vector<16x32xf32>
    %c1_59 = arith.constant 1 : index
    %c0_60 = arith.constant 0 : index
    %c0_61 = arith.constant 0 : index
    %96 = vector.load %arg15[%c1_59, %c0_60, %c0_61] : memref<3x64x32xf32, #tpu.memory_space<vmem>>, vector<1x32x32xf32>
    %97 = vector.shape_cast %96 : vector<1x32x32xf32> to vector<32x32xf32>
    %cst_62 = arith.constant dense<0.000000e+00> : vector<16x32xf32>
    %98 = tpu.matmul %6, %97, %cst_62 {dimension_numbers = #tpu.dot_dimension_numbers<[1], [0], [0], [1], [0, 0, 1, 1], [], []>} : vector<16x32xf32>, vector<32x32xf32>, vector<16x32xf32> -> vector<16x32xf32>
    %c1_63 = arith.constant 1 : index
    %c32_64 = arith.constant 32 : index
    %c0_65 = arith.constant 0 : index
    %99 = vector.load %arg15[%c1_63, %c32_64, %c0_65] : memref<3x64x32xf32, #tpu.memory_space<vmem>>, vector<1x32x32xf32>
    %100 = vector.shape_cast %99 : vector<1x32x32xf32> to vector<32x32xf32>
    %cst_66 = arith.constant dense<0.000000e+00> : vector<16x32xf32>
    %101 = tpu.matmul %95, %100, %cst_66 {dimension_numbers = #tpu.dot_dimension_numbers<[1], [0], [0], [1], [0, 0, 1, 1], [], []>} : vector<16x32xf32>, vector<32x32xf32>, vector<16x32xf32> -> vector<16x32xf32>
    %102 = arith.addf %98, %101 : vector<16x32xf32>
    %c1_67 = arith.constant 1 : index
    %c0_68 = arith.constant 0 : index
    %c0_69 = arith.constant 0 : index
    %103 = vector.load %arg16[%c1_67, %c0_68, %c0_69] : memref<3x1x32xf32, #tpu.memory_space<vmem>>, vector<1x1x32xf32>
    %104 = vector.shape_cast %103 : vector<1x1x32xf32> to vector<1x32xf32>
    %105 = vector.broadcast %104 : vector<1x32xf32> to vector<16x32xf32>
    %106 = arith.addf %102, %105 : vector<16x32xf32>
    %107 = vector.shape_cast %106 : vector<16x32xf32> to vector<2x8x32xf32>
    %c0_70 = arith.constant 0 : index
    %c1_71 = arith.constant 1 : index
    %c0_72 = arith.constant 0 : index
    %c0_73 = arith.constant 0 : index
    %108 = vector.load %arg10[%c0_70, %c1_71, %c0_72, %c0_73] : memref<2x3x8x32xf32, #tpu.memory_space<vmem>>, vector<2x1x8x32xf32>
    %109 = vector.shape_cast %108 : vector<2x1x8x32xf32> to vector<2x8x32xf32>
    %110 = vector.shape_cast %107 : vector<2x8x32xf32> to vector<2x1x8x32xf32>
    tpu.vector_store %arg10[%c0_70, %c1_71, %c0_72, %c0_73], %110 {strides = array<i32>} : memref<2x3x8x32xf32, #tpu.memory_space<vmem>>, vector<2x1x8x32xf32>,
    %c2 = arith.constant 2 : index
    %c0_74 = arith.constant 0 : index
    %c0_75 = arith.constant 0 : index
    %111 = vector.load %arg11[%c2, %c0_74, %c0_75] : memref<3x32x32xf32, #tpu.memory_space<vmem>>, vector<1x32x32xf32>
    %112 = vector.shape_cast %111 : vector<1x32x32xf32> to vector<32x32xf32>
    %cst_76 = arith.constant dense<0.000000e+00> : vector<16x32xf32>
    %113 = tpu.matmul %8, %112, %cst_76 {dimension_numbers = #tpu.dot_dimension_numbers<[1], [0], [0], [1], [0, 0, 1, 1], [], []>} : vector<16x32xf32>, vector<32x32xf32>, vector<16x32xf32> -> vector<16x32xf32>
    %c2_77 = arith.constant 2 : index
    %c0_78 = arith.constant 0 : index
    %c0_79 = arith.constant 0 : index
    %114 = vector.load %arg12[%c2_77, %c0_78, %c0_79] : memref<3x1x32xf32, #tpu.memory_space<vmem>>, vector<1x1x32xf32>
    %115 = vector.shape_cast %114 : vector<1x1x32xf32> to vector<1x32xf32>
    %116 = vector.broadcast %115 : vector<1x32xf32> to vector<16x32xf32>
    %117 = arith.addf %113, %116 : vector<16x32xf32>
    %c2_80 = arith.constant 2 : index
    %c0_81 = arith.constant 0 : index
    %c0_82 = arith.constant 0 : index
    %118 = vector.load %arg13[%c2_80, %c0_81, %c0_82] : memref<3x32x64xf32, #tpu.memory_space<vmem>>, vector<1x32x64xf32>
    %119 = vector.shape_cast %118 : vector<1x32x64xf32> to vector<32x64xf32>
    %cst_83 = arith.constant dense<0.000000e+00> : vector<16x64xf32>
    %120 = tpu.matmul %4, %119, %cst_83 {dimension_numbers = #tpu.dot_dimension_numbers<[1], [0], [0], [1], [0, 0, 1, 1], [], []>} : vector<16x32xf32>, vector<32x64xf32>, vector<16x64xf32> -> vector<16x64xf32>
    %c2_84 = arith.constant 2 : index
    %c0_85 = arith.constant 0 : index
    %c0_86 = arith.constant 0 : index
    %121 = vector.load %arg14[%c2_84, %c0_85, %c0_86] : memref<3x1x64xf32, #tpu.memory_space<vmem>>, vector<1x1x64xf32>
    %122 = vector.shape_cast %121 : vector<1x1x64xf32> to vector<1x64xf32>
    %123 = vector.broadcast %122 : vector<1x64xf32> to vector<16x64xf32>
    %124 = arith.addf %120, %123 : vector<16x64xf32>
    %125 = vector.extract_strided_slice %124 {offsets = [0, 0], sizes = [16, 32], strides = [1, 1]} : vector<16x64xf32> to vector<16x32xf32>
    %126 = vector.extract_strided_slice %124 {offsets = [0, 32], sizes = [16, 32], strides = [1, 1]} : vector<16x64xf32> to vector<16x32xf32>
    %127 = vector.shape_cast %117 : vector<16x32xf32> to vector<2x8x32xf32>
    %128 = vector.shape_cast %125 : vector<16x32xf32> to vector<2x8x32xf32>
    %129 = vector.shape_cast %126 : vector<16x32xf32> to vector<2x8x32xf32>
    "tpu.trace_start"() <{level = 10 : i32, message = "bqd,bkd->bqk"}> : () -> ()
    %cst_87 = arith.constant dense<0.000000e+00> : vector<2x8x8xf32>
    %130 = tpu.matmul %127, %128, %cst_87 {dimension_numbers = #tpu.dot_dimension_numbers<[2], [2], [1], [1], [0, 0, 0, 1, 1, 1], [0], [0]>} : vector<2x8x32xf32>, vector<2x8x32xf32>, vector<2x8x8xf32> -> vector<2x8x8xf32>
    "tpu.trace_stop"() : () -> ()
    %cst_88 = arith.constant dense<0xFF800000> : vector<2x8xf32>
    %131 = vector.multi_reduction <maximumf>, %130, %cst_88 [2] : vector<2x8x8xf32> to vector<2x8xf32>
    %132 = vector.shape_cast %131 : vector<2x8xf32> to vector<2x8x1xf32>
    %133 = vector.broadcast %132 : vector<2x8x1xf32> to vector<2x8x8xf32>
    %134 = arith.subf %130, %133 : vector<2x8x8xf32>
    %135 = math.exp %134 : vector<2x8x8xf32>
    %cst_89 = arith.constant dense<0.000000e+00> : vector<2x8xf32>
    %136 = vector.multi_reduction <add>, %135, %cst_89 [2] : vector<2x8x8xf32> to vector<2x8xf32>
    %137 = vector.shape_cast %136 : vector<2x8xf32> to vector<2x8x1xf32>
    "tpu.trace_start"() <{level = 10 : i32, message = "bqk,bkd->bqd"}> : () -> ()
    %cst_90 = arith.constant dense<0.000000e+00> : vector<2x8x32xf32>
    %138 = tpu.matmul %135, %129, %cst_90 {dimension_numbers = #tpu.dot_dimension_numbers<[2], [1], [1], [2], [0, 0, 0, 1, 1, 2], [0], [0]>} : vector<2x8x8xf32>, vector<2x8x32xf32>, vector<2x8x32xf32> -> vector<2x8x32xf32>
    "tpu.trace_stop"() : () -> ()
    %139 = tpu.reciprocal %137 {approx = true} : vector<2x8x1xf32> -> vector<2x8x1xf32>
    %140 = arith.mulf %137, %139 : vector<2x8x1xf32>
    %cst_91 = arith.constant 2.000000e+00 : f32
    %141 = vector.broadcast %cst_91 : f32 to vector<2x8x1xf32>
    %142 = arith.subf %141, %140 : vector<2x8x1xf32>
    %143 = arith.mulf %139, %142 : vector<2x8x1xf32>
    %144 = vector.broadcast %143 : vector<2x8x1xf32> to vector<2x8x32xf32>
    %145 = arith.mulf %138, %144 : vector<2x8x32xf32>
    %146 = vector.shape_cast %145 : vector<2x8x32xf32> to vector<16x32xf32>
    %c2_92 = arith.constant 2 : index
    %c0_93 = arith.constant 0 : index
    %c0_94 = arith.constant 0 : index
    %147 = vector.load %arg15[%c2_92, %c0_93, %c0_94] : memref<3x64x32xf32, #tpu.memory_space<vmem>>, vector<1x32x32xf32>
    %148 = vector.shape_cast %147 : vector<1x32x32xf32> to vector<32x32xf32>
    %cst_95 = arith.constant dense<0.000000e+00> : vector<16x32xf32>
    %149 = tpu.matmul %8, %148, %cst_95 {dimension_numbers = #tpu.dot_dimension_numbers<[1], [0], [0], [1], [0, 0, 1, 1], [], []>} : vector<16x32xf32>, vector<32x32xf32>, vector<16x32xf32> -> vector<16x32xf32>
    %c2_96 = arith.constant 2 : index
    %c32_97 = arith.constant 32 : index
    %c0_98 = arith.constant 0 : index
    %150 = vector.load %arg15[%c2_96, %c32_97, %c0_98] : memref<3x64x32xf32, #tpu.memory_space<vmem>>, vector<1x32x32xf32>
    %151 = vector.shape_cast %150 : vector<1x32x32xf32> to vector<32x32xf32>
    %cst_99 = arith.constant dense<0.000000e+00> : vector<16x32xf32>
    %152 = tpu.matmul %146, %151, %cst_99 {dimension_numbers = #tpu.dot_dimension_numbers<[1], [0], [0], [1], [0, 0, 1, 1], [], []>} : vector<16x32xf32>, vector<32x32xf32>, vector<16x32xf32> -> vector<16x32xf32>
    %153 = arith.addf %149, %152 : vector<16x32xf32>
    %c2_100 = arith.constant 2 : index
    %c0_101 = arith.constant 0 : index
    %c0_102 = arith.constant 0 : index
    %154 = vector.load %arg16[%c2_100, %c0_101, %c0_102] : memref<3x1x32xf32, #tpu.memory_space<vmem>>, vector<1x1x32xf32>
    %155 = vector.shape_cast %154 : vector<1x1x32xf32> to vector<1x32xf32>
    %156 = vector.broadcast %155 : vector<1x32xf32> to vector<16x32xf32>
    %157 = arith.addf %153, %156 : vector<16x32xf32>
    %158 = vector.shape_cast %157 : vector<16x32xf32> to vector<2x8x32xf32>
    %c0_103 = arith.constant 0 : index
    %c2_104 = arith.constant 2 : index
    %c0_105 = arith.constant 0 : index
    %c0_106 = arith.constant 0 : index
    %159 = vector.load %arg10[%c0_103, %c2_104, %c0_105, %c0_106] : memref<2x3x8x32xf32, #tpu.memory_space<vmem>>, vector<2x1x8x32xf32>
    %160 = vector.shape_cast %159 : vector<2x1x8x32xf32> to vector<2x8x32xf32>
    %161 = vector.shape_cast %158 : vector<2x8x32xf32> to vector<2x1x8x32xf32>
    tpu.vector_store %arg10[%c0_103, %c2_104, %c0_105, %c0_106], %161 {strides = array<i32>} : memref<2x3x8x32xf32, #tpu.memory_space<vmem>>, vector<2x1x8x32xf32>,
    return
  }
  func.func @transform_0(%arg0: i32) -> (i32, i32, i32) {
    %c0_i32 = arith.constant 0 : i32
    %c0_i32_0 = arith.constant 0 : i32
    %c0_i32_1 = arith.constant 0 : i32
    return %arg0, %c0_i32, %c0_i32_0 : i32, i32, i32
  }
  func.func @transform_1(%arg0: i32) -> (i32, i32, i32) {
    %c0_i32 = arith.constant 0 : i32
    %c0_i32_0 = arith.constant 0 : i32
    %c0_i32_1 = arith.constant 0 : i32
    return %arg0, %c0_i32, %c0_i32_0 : i32, i32, i32
  }
  func.func @transform_2(%arg0: i32) -> (i32, i32, i32) {
    %c0_i32 = arith.constant 0 : i32
    %c0_i32_0 = arith.constant 0 : i32
    %c0_i32_1 = arith.constant 0 : i32
    return %arg0, %c0_i32, %c0_i32_0 : i32, i32, i32
  }
  func.func @transform_9(%arg0: i32) -> (i32, i32, i32, i32) {
    %c0_i32 = arith.constant 0 : i32
    %c0_i32_0 = arith.constant 0 : i32
    %c0_i32_1 = arith.constant 0 : i32
    %c0_i32_2 = arith.constant 0 : i32
    return %arg0, %c0_i32, %c0_i32_0, %c0_i32_1 : i32, i32, i32, i32
  }
}

</mosaic_0001>

<bundles_post_ra>
// kernel: tpu_custom_call.1
= control target key start
LH: loop header
LB: loop body
LE: loop exit
PB: predicated region body
PF: predicated region fallthrough
CT: control target
= control target key end

     0   :  { %14 = vsyncpa [#allocation9], 0  ;;  %s3554_s0 = inlined_call_operand.vmem [shape: f32[2,8,32], index: 0, kind: input, shape index: {}]   ;;  %s3555_s1 = inlined_call_operand.vmem [shape: f32[2,8,32], index: 1, kind: input, shape index: {}]   ;;  %s3556_s2 = inlined_call_operand.vmem [shape: f32[2,8,32], index: 2, kind: input, shape index: {}]   ;;  %s3557_s3 = inlined_call_operand.vmem [shape: f32[3,32,32], index: 3, kind: input, shape index: {}]   ;;  %s3558_s4 = inlined_call_operand.vmem [shape: f32[3,1,32], index: 4, kind: input, shape index: {}]   ;;  %s3559_s5 = inlined_call_operand.vmem [shape: f32[3,32,64], index: 5, kind: input, shape index: {}]   ;;  %s3560_s6 = inlined_call_operand.vmem [shape: f32[3,1,64], index: 6, kind: input, shape index: {}]   ;;  %s3561_s7 = inlined_call_operand.vmem [shape: f32[3,64,32], index: 7, kind: input, shape index: {}]   ;;  %s3562_s8 = inlined_call_operand.vmem [shape: f32[3,1,32], index: 8, kind: input, shape index: {}]   ;;  %s3563_s9 = inlined_call_operand.hbm [shape: f32[2,3,8,32], index: 9, kind: output, shape index: {}]  }
   0x1   :  { %v3110_v0 = vld [vmem:[%s3557_s3] sm:$0xff]  ;;  %v3115_v1 = vld [vmem:[%s3557_s3 + $0x8] sm:$0xff]  ;;  %v3120_v2 = vld [vmem:[%s3557_s3 + $0x10] sm:$0xff] }
   0x2   :  { %v3125_v3 = vld [vmem:[%s3557_s3 + $0x18] sm:$0xff]  ;;  %v3130_v4 = vld [vmem:[%s3557_s3 + $0x20] sm:$0xff]  ;;  %v3135_v5 = vld [vmem:[%s3557_s3 + $0x28] sm:$0xff] }
   0x3   :  { %v3140_v6 = vld [vmem:[%s3557_s3 + $0x30] sm:$0xff]  ;;  %v3145_v7 = vld [vmem:[%s3557_s3 + $0x38] sm:$0xff]  ;;  %v3150_v8 = vld [vmem:[%s3557_s3 + $0x40] sm:$0xff] }
   0x4   :  { %v3155_v9 = vld [vmem:[%s3557_s3 + $0x48] sm:$0xff]  ;;  %v3160_v10 = vld [vmem:[%s3557_s3 + $0x50] sm:$0xff]  ;;  %v3165_v11 = vld [vmem:[%s3557_s3 + $0x58] sm:$0xff] }
   0x5   :  { %88 = vsyncadd [#allocation10], 1536 }
   0x6   :  { %3037 = dma.done.wait [#allocation10], 1536 }
   0x7   :  { %3038 = vsyncadd [#allocation10], 4294965760 }
   0x8   :  { %v110_v12 = vld [vmem:[%s3558_s4] sm:$0x7] }
   0x9   :  { %111 = vst [vmem:[#allocation3] sm:$0x7] %v110_v12 }
   0xa   :  { %136 = vsyncadd [#allocation12], 48 }
   0xb   :  { %3039 = dma.done.wait [#allocation12], 48 }
   0xc   :  { %3040 = vsyncadd [#allocation12], 4294967248 }
   0xd   :  { %v173_v13 = vld [vmem:[%s3559_s5] sm:$0xff]  ;;  %v175_v14 = vld [vmem:[%s3559_s5 + $0x8] sm:$0xff]  ;;  %v177_v15 = vld [vmem:[%s3559_s5 + $0x10] sm:$0xff] }
   0xe   :  { %v179_v16 = vld [vmem:[%s3559_s5 + $0x18] sm:$0xff]  ;;  %v3185_v17 = vld [vmem:[%s3559_s5 + $0x20] sm:$0xff]  ;;  %v3190_v18 = vld [vmem:[%s3559_s5 + $0x28] sm:$0xff] }
   0xf   :  { %v3195_v19 = vld [vmem:[%s3559_s5 + $0x30] sm:$0xff]  ;;  %v3200_v20 = vld [vmem:[%s3559_s5 + $0x38] sm:$0xff]  ;;  %v3205_v21 = vld [vmem:[%s3559_s5 + $0x40] sm:$0xff] }
  0x10   :  { %v3210_v22 = vld [vmem:[%s3559_s5 + $0x48] sm:$0xff]  ;;  %v3215_v23 = vld [vmem:[%s3559_s5 + $0x50] sm:$0xff]  ;;  %v3220_v24 = vld [vmem:[%s3559_s5 + $0x58] sm:$0xff] }
  0x11   :  { %204 = vsyncadd [#allocation14], 1536 }
  0x12   :  { %3041 = dma.done.wait [#allocation14], 1536 }
  0x13   :  { %3042 = vsyncadd [#allocation14], 4294965760 }
  0x14   :  { %v226_v25 = vld [vmem:[%s3560_s6] sm:$0x7] }
  0x15   :  { %227 = vst [vmem:[#allocation5] sm:$0x7] %v226_v25 }
  0x16   :  { %252 = vsyncadd [#allocation16], 48 }
  0x17   :  { %3043 = dma.done.wait [#allocation16], 48 }
  0x18   :  { %3044 = vsyncadd [#allocation16], 4294967248 }
  0x19   :  { %v3228_v26 = vld [vmem:[%s3561_s7] sm:$0xff]  ;;  %v3233_v27 = vld [vmem:[%s3561_s7 + $0x8] sm:$0xff]  ;;  %v3238_v28 = vld [vmem:[%s3561_s7 + $0x10] sm:$0xff] }
  0x1a   :  { %v3243_v29 = vld [vmem:[%s3561_s7 + $0x18] sm:$0xff]  ;;  %v3248_v30 = vld [vmem:[%s3561_s7 + $0x20] sm:$0xff]  ;;  %v3253_v31 = vld [vmem:[%s3561_s7 + $0x28] sm:$0xff] }
  0x1b   :  { %v3258_v32 = vld [vmem:[%s3561_s7 + $0x30] sm:$0xff]  ;;  %v3263_v33 = vld [vmem:[%s3561_s7 + $0x38] sm:$0xff]  ;;  %v3268_v34 = vld [vmem:[%s3561_s7 + $0x40] sm:$0xff] }
  0x1c   :  { %v3273_v35 = vld [vmem:[%s3561_s7 + $0x48] sm:$0xff]  ;;  %v3278_v36 = vld [vmem:[%s3561_s7 + $0x50] sm:$0xff]  ;;  %v3283_v37 = vld [vmem:[%s3561_s7 + $0x58] sm:$0xff] }
  0x1d   :  { %v3288_v38 = vld [vmem:[%s3561_s7 + $0x60] sm:$0xff]  ;;  %v3293_v39 = vld [vmem:[%s3561_s7 + $0x68] sm:$0xff]  ;;  %v3298_v40 = vld [vmem:[%s3561_s7 + $0x70] sm:$0xff] }
  0x1e   :  { %v3303_v41 = vld [vmem:[%s3561_s7 + $0x78] sm:$0xff]  ;;  %v3308_v42 = vld [vmem:[%s3561_s7 + $0x80] sm:$0xff]  ;;  %v3313_v43 = vld [vmem:[%s3561_s7 + $0x88] sm:$0xff] }
  0x1f   :  { %v3318_v44 = vld [vmem:[%s3561_s7 + $0x90] sm:$0xff]  ;;  %v3323_v45 = vld [vmem:[%s3561_s7 + $0x98] sm:$0xff]  ;;  %v3328_v46 = vld [vmem:[%s3561_s7 + $0xa0] sm:$0xff] }
  0x20   :  { %v3333_v47 = vld [vmem:[%s3561_s7 + $0xa8] sm:$0xff]  ;;  %v3338_v48 = vld [vmem:[%s3561_s7 + $0xb0] sm:$0xff]  ;;  %v3343_v49 = vld [vmem:[%s3561_s7 + $0xb8] sm:$0xff] }
  0x21   :  { %344 = vsyncadd [#allocation18], 3072 }
  0x22   :  { %3045 = dma.done.wait [#allocation18], 3072 }
  0x23   :  { %3046 = vsyncadd [#allocation18], 4294964224 }
  0x24   :  { %v366_v50 = vld [vmem:[%s3562_s8] sm:$0x7] }
  0x25   :  { %367 = vst [vmem:[#allocation7] sm:$0x7] %v366_v50 }
  0x26   :  { %392 = vsyncadd [#allocation20], 48 }
  0x27   :  { %3047 = dma.done.wait [#allocation20], 48 }
  0x28   :  { %3048 = vsyncadd [#allocation20], 4294967248  ;;  %v2883_v51 = vpack.c.bf16 %v3115_v1, %v3110_v0  ;;  %v2887_v52 = vpack.c.bf16 %v3125_v3, %v3120_v2  ;;  %v3355_v53 = vld [vmem:[%s3554_s0] sm:$0xff]  ;;  %vm414_vm0 = vcmask 261120   ;;  %v2891_v54 = vpack.c.bf16 %v175_v14, %v173_v13  ;;  %v3362_v55 = vld [vmem:[%s3554_s0 + $0x8] sm:$0xff]  ;;  %s3053_s0 = smov 96  }
  0x29   :  { %2699 = vmatprep.mubr.msk.f32.mxu1 %vm414_vm0, %v3355_v53  ;;  %v2895_v56 = vpack.c.bf16 %v179_v16, %v177_v15  ;;  %v3367_v57 = vld [vmem:[%s3555_s1] sm:$0xff]  ;;  %v3376_v58 = vld [vmem:[%s3555_s1 + $0x8] sm:$0xff]  ;;  %v3051_v59 = vmov 0.0   ;;  %vm3052_vm1 = vmmov 0   ;;  %vm740_vm2 = vcmask 64512  }
  0x2a   :  { %2884 = vmatprep.subr.bf16.mxu1 %v2883_v51  ;;  %2713 = vmatprep.subr.mxu0 %v3051_v59  ;;  %v2547_v62 = vld [vmem:[#allocation5] ss:$0 sm:$0xff]  ;;  %v2544_v0 = vld [vmem:[#allocation3] ss:$0 sm:$0xff] }
  0x2b   :  { %2886 = vmatpush3.bf16.msra.mxu1 %v2883_v51  ;;  %2715 = vmatprep.mubr.msk.f32.mxu0 %vm3052_vm1, %v3051_v59 }
  0x2c   :  { %2888 = vmatprep.subr.bf16.mxu1 %v2887_v52 }
  0x2f   :  { %2890 = vmatpush3.bf16.msra.mxu1 %v2887_v52 }
  0x30   :  { %2892 = vmatprep.subr.bf16.mxu1 %v2891_v54 }
  0x32   :  { %2700 = vmatmul.mubr.msk.f32.vlgmr.msra.gmra.mrb[0].mxu1 %vm414_vm0, %v3362_v55 }
  0x33   :  { %2894 = vmatpush3.bf16.msra.mxu1 %v2891_v54  ;;  %2710 = vmatprep.mubr.msk.f32.mxu1 %vm414_vm0, %v3367_v57 }
  0x34   :  { %2896 = vmatprep.subr.bf16.mxu1 %v2895_v56 }
  0x37   :  { %2898 = vmatpush3.bf16.msra.mxu1 %v2895_v56  ;;  %v2915_v56 = vpack.c.bf16 %v3135_v5, %v3130_v4  ;;  %v2923_v4 = vpack.c.bf16 %v3190_v18, %v3185_v17  ;;  %v3426_v17 = vld [vmem:[%s3556_s2 + $0x8] sm:$0xff]  ;;  %v2899_v18 = vpack.c.bf16 %v3253_v31, %v3248_v30 }
  0x38   :  { %2718 = vmatprep.subr.mxu1 %v3051_v59 }
  0x3a   :  { %2711 = vmatmul.mubr.msk.f32.vlgmr.msra.gmra.mrb[2].mxu1 %vm414_vm0, %v3376_v58 }
  0x3b   :  { %2720 = vmatprep.mubr.msk.f32.mxu1 %vm3052_vm1, %v3051_v59 }
 0x105   :  { %v2701_v60 = vpop.f32.mrb[0].mxu1 }
 0x106   :  { %v487_v61 = vpop.f32.mrb[1].mxu1  ;;  %v493_v12 = vadd.f32 %v2701_v60, %v2544_v0 }
 0x107   :  { %v488_v13 = vadd.f32 %v2544_v0, %v487_v61 }
 0x10d   :  { %v2712_v63 = vpop.f32.mrb[2].mxu1 }
 0x10e   :  { %v585_v1 = vadd.f32 %v2712_v63, %v2547_v62  ;;  %v579_v2 = vpop.f32.mrb[3].mxu1 }
 0x10f   :  { %v580_v3 = vadd.f32 %v2547_v62, %v579_v2  ;;  %v2919_v2 = vpack.c.bf16 %v3145_v7, %v3140_v6  ;;  %v2927_v6 = vpack.c.bf16 %v3200_v20, %v3195_v19  ;;  %v3417_v7 = vld [vmem:[%s3556_s2] sm:$0xff]  ;;  %v2903_v19 = vpack.c.bf16 %v3263_v33, %v3258_v32  ;;  %s3054_s2 = smov [#allocation8]  }
 0x110   :  { %835 = vrot.lane.b32.xlu1 %v585_v1, %s3053_s0  ;;  %2719 = vmatpush3.xpose.msk.msra.mxu1 %vm414_vm0, %v585_v1  ;;  %v2907_v20 = vpack.c.bf16 %v3233_v27, %v3228_v26  ;;  %v2911_v26 = vpack.c.bf16 %v3243_v29, %v3238_v28  ;;  %v2561_v28 = vld [vmem:[#allocation3 + $0x1] ss:$0 sm:$0xff]  ;;  %s2479_s22 = sshll.u32 %s3054_s2, 4  ;;  %s2480_s22 = int_to_ptr.vmem [resolvable:$true] %s2479_s22 }
 0x111   :  { %2714 = vmatpush3.xpose.msk.msra.mxu0 %vm414_vm0, %v580_v3  ;;  %2728 = vmatprep.subr.mxu1 %v3051_v59  ;;  %s3015_s23 = scalar_lea.vmem %s2480_s22, 768  ;;  %p3020_p1 = scmp.lt.s32.totalorder %s2480_s22, %s2480_s22 }
 0x112   :  { %2723 = vmatprep.subr.mxu0 %v3051_v59  ;;  %p3016_p0 = scmp.ne.s32.totalorder %s2480_s22, %s3015_s23  ;;  %p3021_p2 = scmp.lt.s32.totalorder %s3015_s23, %s3015_s23 }
 0x113   :  { %2721 = vmatmul.mubr.msk.f32.vlgmr.msra.gmra.mrb[4].mxu1 %vm414_vm0, %v493_v12 }
 0x114   :  { %759 = vrot.lane.b32.xlu1 %v580_v3, %s3053_s0  ;;  %2716 = vmatmul.mubr.msk.f32.vlgmr.msra.gmra.mrb[0].mxu0 %vm414_vm0, %v488_v13  ;;  %p3022_p3 = por %p3021_p2, %p3020_p1 }
 0x115   :  { %2730 = vmatprep.mubr.msk.f32.mxu1 %vm3052_vm1, %v3051_v59  ;;  %2725 = vmatprep.mubr.msk.f32.mxu0 %vm3052_vm1, %v3051_v59 }
 0x116   :  { %p3023_p4 = pnand %p3022_p3, %p3016_p0 }
 0x182   :  { %v836_v14 = vpop.permute.xlu1 %835 }
 0x183   :  { %2729 = vmatpush3.msra.mxu1 %v836_v14 }
 0x184   :  { %2916 = vmatprep.subr.bf16.mxu1 %v2915_v56 }
 0x186   :  { %v760_v15 = vpop.permute.xlu1 %759 }
 0x187   :  { %2724 = vmatpush3.msra.mxu0 %v760_v15 }
 0x188   :  { %2900 = vmatprep.subr.bf16.mxu0 %v2899_v18 }
 0x1e6   :  { %v736_v16 = vpop.f32.mrb[4].mxu1 }
 0x1e7   :  { %v660_v25 = vpop.f32.mrb[0].mxu0  ;;  %v2722_v50 = vpop.f32.mrb[5].mxu1  ;;  %v744_v51 = vsel %vm740_vm2, %v736_v16, -inf }
 0x1e8   :  { %745 = vmax.xlane.f32.xlu0 %v744_v51  ;;  %v2717_v52 = vpop.f32.mrb[1].mxu0  ;;  %v741_v54 = vsel %vm740_vm2, %v660_v25, -inf }
 0x1ec   :  { %742 = vmax.xlane.f32.xlu0 %v741_v54 }
 0x275   :  { %v746_v60 = vpop.xlane.xlu0 %745 }
 0x276   :  { %v748_v61 = vsub.f32 %v736_v16, %v746_v60 }
 0x278   :  { %v751_v62 = vmul.f32 1.442695, %v748_v61 }
 0x279   :  { %v743_v63 = vpop.xlane.xlu0 %742 }
 0x27a   :  { %2991 = vpow2.f32 %v751_v62  ;;  %v747_v0 = vsub.f32 %v660_v25, %v743_v63 }
 0x27c   :  { %v749_v1 = vmul.f32 1.442695, %v747_v0  ;;  %v2564_v0 = vld [vmem:[#allocation5 + $0x1] ss:$0 sm:$0xff] }
 0x27e   :  { %2993 = vpow2.f32 %v749_v1 }
 0x284   :  { %v2992_v3 = vpop.eup %2991 }
 0x285   :  { %2731 = vmatmul.mubr.msk.f32.vlgmr.msra.gmra.mrb[6].mxu1 %vm740_vm2, %v2992_v3  ;;  %v756_v12 = vsel %vm740_vm2, %v2992_v3, 0.0 }
 0x286   :  { %2918 = vmatpush3.bf16.msra.mxu1 %v2915_v56  ;;  %757 = vadd.xlane.f32.xlu1 %v756_v12 }
 0x287   :  { %2920 = vmatprep.subr.bf16.mxu1 %v2919_v2  ;;  %2763 = vmatprep.mubr.msk.f32.mxu1 %vm414_vm0, %v3367_v57 }
 0x288   :  { %v2994_v5 = vpop.eup %2993 }
 0x289   :  { %2726 = vmatmul.mubr.msk.f32.vlgmr.msra.gmra.mrb[2].mxu0 %vm740_vm2, %v2994_v5  ;;  %v753_v13 = vsel %vm740_vm2, %v2994_v5, 0.0 }
 0x28a   :  { %2922 = vmatpush3.bf16.msra.mxu1 %v2919_v2  ;;  %754 = vadd.xlane.f32.xlu0 %v753_v13  ;;  %v2560_v13 = vld [vmem:[#allocation7] ss:$0 sm:$0xff] }
 0x28b   :  { %2924 = vmatprep.subr.bf16.mxu1 %v2923_v4  ;;  %2902 = vmatpush3.bf16.msra.mxu0 %v2899_v18 }
 0x28c   :  { %2904 = vmatprep.subr.bf16.mxu0 %v2903_v19 }
 0x28d   :  { %2764 = vmatmul.mubr.msk.f32.vlgmr.msra.gmra.mrb[8].mxu1 %vm414_vm0, %v3376_v58 }
 0x28e   :  { %2926 = vmatpush3.bf16.msra.mxu1 %v2923_v4  ;;  %2774 = vmatprep.mubr.msk.f32.mxu1 %vm414_vm0, %v3417_v7 }
 0x28f   :  { %2928 = vmatprep.subr.bf16.mxu1 %v2927_v6  ;;  %2906 = vmatpush3.bf16.msra.mxu0 %v2903_v19 }
 0x290   :  { %2908 = vmatprep.subr.bf16.mxu0 %v2907_v20 }
 0x292   :  { %2930 = vmatpush3.bf16.msra.mxu1 %v2927_v6 }
 0x293   :  { %2782 = vmatprep.subr.mxu1 %v3051_v59 }
 0x295   :  { %2775 = vmatmul.mubr.msk.f32.vlgmr.msra.gmra.mrb[10].mxu1 %vm414_vm0, %v3426_v17 }
 0x296   :  { %2784 = vmatprep.mubr.msk.f32.mxu1 %vm3052_vm1, %v3051_v59 }
 0x313   :  { %v758_v15 = vpop.xlane.xlu1 %757 }
 0x317   :  { %v755_v14 = vpop.xlane.xlu0 %754 }
 0x318   :  { %2995 = vrcp.f32 %v755_v14 }
 0x319   :  { %2997 = vrcp.f32 %v758_v15 }
 0x322   :  { %v2996_v16 = vpop.eup %2995 }
 0x323   :  { %v2998_v25 = vpop.eup %2997  ;;  %v913_v50 = vmul.f32 %v2996_v16, %v755_v14 }
 0x324   :  { %v914_v51 = vmul.f32 %v2998_v25, %v758_v15 }
 0x325   :  { %v915_v30 = vsub.f32 2.0, %v913_v50 }
 0x326   :  { %v916_v31 = vsub.f32 2.0, %v914_v51 }
 0x327   :  { %v917_v56 = vmul.f32 %v2996_v16, %v915_v30  ;;  %v2947_v30 = vpack.c.bf16 %v3155_v9, %v3150_v8  ;;  %v2955_v9 = vpack.c.bf16 %v3210_v22, %v3205_v21  ;;  %v2935_v21 = vpack.c.bf16 %v3303_v41, %v3298_v40 }
 0x328   :  { %v918_v32 = vmul.f32 %v2998_v25, %v916_v31  ;;  %v2939_v22 = vpack.c.bf16 %v3273_v35, %v3268_v34  ;;  %v2943_v34 = vpack.c.bf16 %v3283_v37, %v3278_v36  ;;  %v2578_v36 = vld [vmem:[#allocation3 + $0x2] ss:$0 sm:$0xff] }
 0x358   :  { %v907_v52 = vpop.f32.mrb[6].mxu1 }
 0x359   :  { %v2732_v54 = vpop.f32.mrb[7].mxu1  ;;  %v920_v62 = vmul.f32 %v918_v32, %v907_v52 }
 0x35c   :  { %v831_v33 = vpop.f32.mrb[2].mxu0 }
 0x35d   :  { %v919_v60 = vmul.f32 %v917_v56, %v831_v33  ;;  %v2727_v61 = vpop.f32.mrb[3].mxu0 }
 0x35e   :  { %v2951_v61 = vpack.c.bf16 %v3165_v11, %v3160_v10  ;;  %v2959_v10 = vpack.c.bf16 %v3220_v24, %v3215_v23  ;;  %v2931_v11 = vpack.c.bf16 %v3293_v39, %v3288_v38 }
 0x35f   :  { %2741 = vmatprep.mubr.msk.f32.mxu0 %vm414_vm0, %v919_v60 }
 0x360   :  { %v2765_v27 = vpop.f32.mrb[8].mxu1  ;;  %2742 = vmatmul.mubr.msk.f32.vlgmr.msra.gmra.mrb[4].mxu0 %vm414_vm0, %v920_v62 }
 0x361   :  { %2910 = vmatpush3.bf16.msra.mxu0 %v2907_v20  ;;  %v1175_v63 = vpop.f32.mrb[9].mxu1  ;;  %2752 = vmatprep.mubr.msk.f32.mxu0 %vm414_vm0, %v3355_v53  ;;  %v1181_v3 = vadd.f32 %v2765_v27, %v2561_v28 }
 0x362   :  { %2912 = vmatprep.subr.bf16.mxu0 %v2911_v26  ;;  %v1176_v4 = vadd.f32 %v2561_v28, %v1175_v63 }
 0x365   :  { %2914 = vmatpush3.bf16.msra.mxu0 %v2911_v26 }
 0x366   :  { %2777 = vmatprep.subr.mxu0 %v3051_v59 }
 0x368   :  { %v2776_v1 = vpop.f32.mrb[10].mxu1  ;;  %2753 = vmatmul.mubr.msk.f32.vlgmr.msra.gmra.mrb[4].mxu0 %vm414_vm0, %v3362_v55 }
 0x369   :  { %v1275_v29 = vadd.f32 %v2776_v1, %v2564_v0  ;;  %v1269_v2 = vpop.f32.mrb[11].mxu1  ;;  %2779 = vmatprep.mubr.msk.f32.mxu0 %vm3052_vm1, %v3051_v59 }
 0x36a   :  { %v1270_v12 = vadd.f32 %v2564_v0, %v1269_v2 }
 0x36b   :  { %2783 = vmatpush3.xpose.msk.msra.mxu1 %vm414_vm0, %v1275_v29  ;;  %1524 = vrot.lane.b32.xlu0 %v1275_v29, %s3053_s0 }
 0x36c   :  { %2792 = vmatprep.subr.mxu1 %v3051_v59 }
 0x36e   :  { %2778 = vmatpush3.xpose.msk.msra.mxu0 %vm414_vm0, %v1270_v12  ;;  %2785 = vmatmul.mubr.msk.f32.vlgmr.msra.gmra.mrb[12].mxu1 %vm414_vm0, %v1181_v3 }
 0x36f   :  { %2787 = vmatprep.subr.mxu0 %v3051_v59  ;;  %2794 = vmatprep.mubr.msk.f32.mxu1 %vm3052_vm1, %v3051_v59 }
 0x371   :  { %2780 = vmatmul.mubr.msk.f32.vlgmr.msra.gmra.mrb[6].mxu0 %vm414_vm0, %v1176_v4 }
 0x372   :  { %2789 = vmatprep.mubr.msk.f32.mxu0 %vm3052_vm1, %v3051_v59 }
 0x3dd   :  { %v1525_v5 = vpop.permute.xlu0 %1524 }
 0x3de   :  { %2793 = vmatpush3.msra.mxu1 %v1525_v5  ;;  %v2581_v5 = vld [vmem:[#allocation5 + $0x2] ss:$0 sm:$0xff] }
 0x3df   :  { %2948 = vmatprep.subr.bf16.mxu1 %v2947_v30 }
 0x43b   :  { %v2754_v6 = vpop.f32.mrb[4].mxu0 }
 0x43c   :  { %v1093_v18 = vadd.f32 %v2754_v6, %v2560_v13  ;;  %v1076_v19 = vpop.f32.mrb[5].mxu0 }
 0x43d   :  { %v1092_v20 = vadd.f32 %v2560_v13, %v1076_v19 }
 0x43e   :  { %1095 = vst.msk [vmem:[#allocation8 + $0x18] sm:$0xff] %vm414_vm0, %v1093_v18 }
 0x43f   :  { %1094 = vst.msk [vmem:[#allocation8] sm:$0xff] %vm414_vm0, %v1092_v20  ;;  %v2577_v20 = vld [vmem:[#allocation7 + $0x1] ss:$0 sm:$0xff] }
 0x441   :  { %v1426_v14 = vpop.f32.mrb[12].mxu1 }
 0x442   :  { %v2786_v15 = vpop.f32.mrb[13].mxu1  ;;  %v1433_v16 = vsel %vm740_vm2, %v1426_v14, -inf }
 0x443   :  { %1434 = vmax.xlane.f32.xlu0 %v1433_v16 }
 0x444   :  { %v1350_v25 = vpop.f32.mrb[6].mxu0 }
 0x445   :  { %v2781_v50 = vpop.f32.mrb[7].mxu0  ;;  %v1430_v51 = vsel %vm740_vm2, %v1350_v25, -inf }
 0x447   :  { %1431 = vmax.xlane.f32.xlu0 %v1430_v51 }
 0x45d   :  { %1448 = vrot.lane.b32.xlu0 %v1270_v12, %s3053_s0 }
 0x4d0   :  { %v1435_v31 = vpop.xlane.xlu0 %1434 }
 0x4d1   :  { %v1437_v52 = vsub.f32 %v1426_v14, %v1435_v31 }
 0x4d3   :  { %v1440_v54 = vmul.f32 1.442695, %v1437_v52 }
 0x4d4   :  { %v1432_v56 = vpop.xlane.xlu0 %1431 }
 0x4d5   :  { %2999 = vpow2.f32 %v1440_v54  ;;  %v1436_v32 = vsub.f32 %v1350_v25, %v1432_v56 }
 0x4d7   :  { %v1438_v33 = vmul.f32 1.442695, %v1436_v32 }
 0x4d8   :  { %v1449_v60 = vpop.permute.xlu0 %1448 }
 0x4d9   :  { %3001 = vpow2.f32 %v1438_v33  ;;  %2788 = vmatpush3.msra.mxu0 %v1449_v60 }
 0x4da   :  { %2932 = vmatprep.subr.bf16.mxu0 %v2931_v11 }
 0x4df   :  { %v3000_v62 = vpop.eup %2999 }
 0x4e0   :  { %2795 = vmatmul.mubr.msk.f32.vlgmr.msra.gmra.mrb[14].mxu1 %vm740_vm2, %v3000_v62  ;;  %v1445_v8 = vsel %vm740_vm2, %v3000_v62, 0.0 }
 0x4e1   :  { %2950 = vmatpush3.bf16.msra.mxu1 %v2947_v30  ;;  %1446 = vadd.xlane.f32.xlu0 %v1445_v8 }
 0x4e2   :  { %2952 = vmatprep.subr.bf16.mxu1 %v2951_v61  ;;  %2827 = vmatprep.mubr.msk.f32.mxu1 %vm414_vm0, %v3417_v7 }
 0x4e3   :  { %v3002_v26 = vpop.eup %3001 }
 0x4e4   :  { %2790 = vmatmul.mubr.msk.f32.vlgmr.msra.gmra.mrb[8].mxu0 %vm740_vm2, %v3002_v26  ;;  %v1442_v27 = vsel %vm740_vm2, %v3002_v26, 0.0 }
 0x4e5   :  { %2954 = vmatpush3.bf16.msra.mxu1 %v2951_v61  ;;  %1443 = vadd.xlane.f32.xlu1 %v1442_v27 }
 0x4e6   :  { %2956 = vmatprep.subr.bf16.mxu1 %v2955_v9  ;;  %2934 = vmatpush3.bf16.msra.mxu0 %v2931_v11  ;;  %v2967_v11 = vpack.c.bf16 %v3343_v49, %v3338_v48 }
 0x4e7   :  { %2936 = vmatprep.subr.bf16.mxu0 %v2935_v21 }
 0x4e8   :  { %2828 = vmatmul.mubr.msk.f32.vlgmr.msra.gmra.mrb[16].mxu1 %vm414_vm0, %v3426_v17 }
 0x4e9   :  { %2958 = vmatpush3.bf16.msra.mxu1 %v2955_v9  ;;  %2838 = vmatprep.mubr.msk.f32.mxu1 %vm414_vm0, %v3355_v53 }
 0x4ea   :  { %2960 = vmatprep.subr.bf16.mxu1 %v2959_v10  ;;  %2938 = vmatpush3.bf16.msra.mxu0 %v2935_v21  ;;  %v2971_v21 = vpack.c.bf16 %v3313_v43, %v3308_v42  ;;  %v2975_v42 = vpack.c.bf16 %v3323_v45, %v3318_v44  ;;  %v2594_v43 = vld [vmem:[#allocation7 + $0x2] ss:$0 sm:$0xff] }
 0x4eb   :  { %2940 = vmatprep.subr.bf16.mxu0 %v2939_v22 }
 0x4ed   :  { %2962 = vmatpush3.bf16.msra.mxu1 %v2959_v10  ;;  %v2963_v10 = vpack.c.bf16 %v3333_v47, %v3328_v46 }
 0x4ee   :  { %2846 = vmatprep.subr.mxu1 %v3051_v59 }
 0x4f0   :  { %2839 = vmatmul.mubr.msk.f32.vlgmr.msra.gmra.mrb[18].mxu1 %vm414_vm0, %v3362_v55 }
 0x4f1   :  { %2848 = vmatprep.mubr.msk.f32.mxu1 %vm3052_vm1, %v3051_v59 }
 0x56e   :  { %v1447_v24 = vpop.xlane.xlu0 %1446 }
 0x572   :  { %v1444_v23 = vpop.xlane.xlu1 %1443 }
 0x573   :  { %3003 = vrcp.f32 %v1444_v23 }
 0x574   :  { %3005 = vrcp.f32 %v1447_v24 }
 0x57d   :  { %v3004_v53 = vpop.eup %3003 }
 0x57e   :  { %v3006_v55 = vpop.eup %3005  ;;  %v1602_v63 = vmul.f32 %v3004_v53, %v1444_v23 }
 0x57f   :  { %v1603_v0 = vmul.f32 %v3006_v55, %v1447_v24 }
 0x580   :  { %v1604_v38 = vsub.f32 2.0, %v1602_v63 }
 0x581   :  { %v1605_v39 = vsub.f32 2.0, %v1603_v0 }
 0x582   :  { %v1606_v29 = vmul.f32 %v3004_v53, %v1604_v38 }
 0x583   :  { %v1607_v40 = vmul.f32 %v3006_v55, %v1605_v39 }
 0x5b3   :  { %v1596_v1 = vpop.f32.mrb[14].mxu1 }
 0x5b4   :  { %v2796_v28 = vpop.f32.mrb[15].mxu1  ;;  %v1609_v12 = vmul.f32 %v1607_v40, %v1596_v1 }
 0x5b7   :  { %v1520_v41 = vpop.f32.mrb[8].mxu0 }
 0x5b8   :  { %v1608_v2 = vmul.f32 %v1606_v29, %v1520_v41  ;;  %v2791_v3 = vpop.f32.mrb[9].mxu0 }
 0x5ba   :  { %2805 = vmatprep.mubr.msk.f32.mxu0 %vm414_vm0, %v1608_v2 }
 0x5bb   :  { %v2829_v35 = vpop.f32.mrb[16].mxu1  ;;  %2806 = vmatmul.mubr.msk.f32.vlgmr.msra.gmra.mrb[10].mxu0 %vm414_vm0, %v1609_v12 }
 0x5bc   :  { %2942 = vmatpush3.bf16.msra.mxu0 %v2939_v22  ;;  %v1867_v4 = vpop.f32.mrb[17].mxu1  ;;  %2816 = vmatprep.mubr.msk.f32.mxu0 %vm414_vm0, %v3367_v57  ;;  %v1873_v19 = vadd.f32 %v2829_v35, %v2578_v36 }
 0x5bd   :  { %2944 = vmatprep.subr.bf16.mxu0 %v2943_v34  ;;  %v1868_v57 = vadd.f32 %v2578_v36, %v1867_v4 }
 0x5c0   :  { %2946 = vmatpush3.bf16.msra.mxu0 %v2943_v34 }
 0x5c1   :  { %2841 = vmatprep.subr.mxu0 %v3051_v59 }
 0x5c3   :  { %v2840_v13 = vpop.f32.mrb[18].mxu1  ;;  %2817 = vmatmul.mubr.msk.f32.vlgmr.msra.gmra.mrb[10].mxu0 %vm414_vm0, %v3376_v58 }
 0x5c4   :  { %v1961_v37 = vadd.f32 %v2840_v13, %v2581_v5  ;;  %v1955_v6 = vpop.f32.mrb[19].mxu1  ;;  %2843 = vmatprep.mubr.msk.f32.mxu0 %vm3052_vm1, %v3051_v59 }
 0x5c5   :  { %v1956_v18 = vadd.f32 %v2581_v5, %v1955_v6 }
 0x5c6   :  { %2847 = vmatpush3.xpose.msk.msra.mxu1 %vm414_vm0, %v1961_v37 }
 0x5c7   :  { %2134 = vrot.lane.b32.xlu1 %v1956_v18, %s3053_s0  ;;  %2856 = vmatprep.subr.mxu1 %v3051_v59 }
 0x5c9   :  { %2842 = vmatpush3.xpose.msk.msra.mxu0 %vm414_vm0, %v1956_v18  ;;  %2849 = vmatmul.mubr.msk.f32.vlgmr.msra.gmra.mrb[20].mxu1 %vm414_vm0, %v1873_v19 }
 0x5ca   :  { %2851 = vmatprep.subr.mxu0 %v3051_v59  ;;  %2858 = vmatprep.mubr.msk.f32.mxu1 %vm3052_vm1, %v3051_v59 }
 0x5cc   :  { %2844 = vmatmul.mubr.msk.f32.vlgmr.msra.gmra.mrb[12].mxu0 %vm414_vm0, %v1868_v57 }
 0x5cd   :  { %2853 = vmatprep.mubr.msk.f32.mxu0 %vm3052_vm1, %v3051_v59 }
 0x639   :  { %v2135_v58 = vpop.permute.xlu1 %2134 }
 0x63a   :  { %2852 = vmatpush3.msra.mxu0 %v2135_v58 }
 0x63b   :  { %2964 = vmatprep.subr.bf16.mxu0 %v2963_v10 }
 0x696   :  { %v2818_v14 = vpop.f32.mrb[10].mxu0 }
 0x697   :  { %v1784_v15 = vadd.f32 %v2818_v14, %v2577_v20  ;;  %v1766_v16 = vpop.f32.mrb[11].mxu0 }
 0x698   :  { %v1783_v25 = vadd.f32 %v2577_v20, %v1766_v16 }
 0x699   :  { %1787 = vst.msk [vmem:[#allocation8 + $0x20] sm:$0xff] %vm414_vm0, %v1784_v15 }
 0x69a   :  { %1786 = vst.msk [vmem:[#allocation8 + $0x8] sm:$0xff] %vm414_vm0, %v1783_v25 }
 0x69c   :  { %v2112_v50 = vpop.f32.mrb[20].mxu1 }
 0x69d   :  { %v2850_v51 = vpop.f32.mrb[21].mxu1  ;;  %v2119_v30 = vsel %vm740_vm2, %v2112_v50, -inf }
 0x69e   :  { %2120 = vmax.xlane.f32.xlu1 %v2119_v30 }
 0x69f   :  { %v2036_v31 = vpop.f32.mrb[12].mxu0 }
 0x6a0   :  { %v2845_v52 = vpop.f32.mrb[13].mxu0  ;;  %v2116_v59 = vsel %vm740_vm2, %v2036_v31, -inf }
 0x6a2   :  { %2117 = vmax.xlane.f32.xlu1 %v2116_v59 }
 0x6b3   :  { %2210 = vrot.lane.b32.xlu1 %v1961_v37, %s3053_s0 }
 0x72b   :  { %v2121_v54 = vpop.xlane.xlu1 %2120 }
 0x72c   :  { %v2123_v56 = vsub.f32 %v2112_v50, %v2121_v54 }
 0x72e   :  { %v2126_v32 = vmul.f32 1.442695, %v2123_v56 }
 0x72f   :  { %v2118_v33 = vpop.xlane.xlu1 %2117 }
 0x730   :  { %3007 = vpow2.f32 %v2126_v32  ;;  %v2122_v60 = vsub.f32 %v2036_v31, %v2118_v33 }
 0x732   :  { %v2124_v61 = vmul.f32 1.442695, %v2122_v60 }
 0x733   :  { %v2211_v62 = vpop.permute.xlu1 %2210 }
 0x734   :  { %3009 = vpow2.f32 %v2124_v61  ;;  %2857 = vmatpush3.msra.mxu1 %v2211_v62 }
 0x73a   :  { %v3008_v8 = vpop.eup %3007 }
 0x73b   :  { %2859 = vmatmul.mubr.msk.f32.vlgmr.msra.gmra.mrb[22].mxu1 %vm740_vm2, %v3008_v8  ;;  %v2131_v9 = vsel %vm740_vm2, %v3008_v8, 0.0 }
 0x73c   :  { %2132 = vadd.xlane.f32.xlu1 %v2131_v9 }
 0x73e   :  { %v3010_v26 = vpop.eup %3009 }
 0x73f   :  { %2854 = vmatmul.mubr.msk.f32.vlgmr.msra.gmra.mrb[14].mxu0 %vm740_vm2, %v3010_v26  ;;  %v2128_v27 = vsel %vm740_vm2, %v3010_v26, 0.0 }
 0x740   :  { %2129 = vadd.xlane.f32.xlu0 %v2128_v27  ;;  %2966 = vmatpush3.bf16.msra.mxu0 %v2963_v10 }
 0x741   :  { %2968 = vmatprep.subr.bf16.mxu0 %v2967_v11 }
 0x744   :  { %2970 = vmatpush3.bf16.msra.mxu0 %v2967_v11 }
 0x745   :  { %2972 = vmatprep.subr.bf16.mxu0 %v2971_v21 }
 0x7c9   :  { %v2133_v23 = vpop.xlane.xlu1 %2132 }
 0x7cd   :  { %v2130_v22 = vpop.xlane.xlu0 %2129 }
 0x7ce   :  { %3011 = vrcp.f32 %v2130_v22 }
 0x7cf   :  { %3013 = vrcp.f32 %v2133_v23 }
 0x7d8   :  { %v3012_v24 = vpop.eup %3011 }
 0x7d9   :  { %v3014_v53 = vpop.eup %3013  ;;  %v2288_v55 = vmul.f32 %v3012_v24, %v2130_v22 }
 0x7da   :  { %v2289_v63 = vmul.f32 %v3014_v53, %v2133_v23 }
 0x7db   :  { %v2290_v46 = vsub.f32 2.0, %v2288_v55 }
 0x7dc   :  { %v2291_v47 = vsub.f32 2.0, %v2289_v63 }
 0x7dd   :  { %v2292_v39 = vmul.f32 %v3012_v24, %v2290_v46 }
 0x7de   :  { %v2293_v48 = vmul.f32 %v3014_v53, %v2291_v47 }
 0x80e   :  { %v2282_v0 = vpop.f32.mrb[22].mxu1 }
 0x80f   :  { %v2860_v38 = vpop.f32.mrb[23].mxu1  ;;  %v2295_v29 = vmul.f32 %v2293_v48, %v2282_v0 }
 0x812   :  { %v2206_v49 = vpop.f32.mrb[14].mxu0 }
 0x813   :  { %v2294_v1 = vmul.f32 %v2292_v39, %v2206_v49  ;;  %v2855_v28 = vpop.f32.mrb[15].mxu0 }
 0x815   :  { %2869 = vmatprep.mubr.msk.f32.mxu0 %vm414_vm0, %v2294_v1 }
 0x816   :  { %2870 = vmatmul.mubr.msk.f32.vlgmr.msra.gmra.mrb[16].mxu0 %vm414_vm0, %v2295_v29 }
 0x817   :  { %2974 = vmatpush3.bf16.msra.mxu0 %v2971_v21  ;;  %2880 = vmatprep.mubr.msk.f32.mxu0 %vm414_vm0, %v3417_v7 }
 0x818   :  { %2976 = vmatprep.subr.bf16.mxu0 %v2975_v42 }
 0x81b   :  { %2978 = vmatpush3.bf16.msra.mxu0 %v2975_v42 }
 0x81e   :  { %2881 = vmatmul.mubr.msk.f32.vlgmr.msra.gmra.mrb[16].mxu0 %vm414_vm0, %v3426_v17 }
 0x8f1   :  { %v2882_v40 = vpop.f32.mrb[16].mxu0 }
 0x8f2   :  { %v2470_v41 = vadd.f32 %v2882_v40, %v2594_v43  ;;  %v2452_v2 = vpop.f32.mrb[17].mxu0 }
 0x8f3   :  { %v2469_v44 = vadd.f32 %v2594_v43, %v2452_v2 }
 0x8f4   :  { %2473 = vst.msk [vmem:[#allocation8 + $0x28] sm:$0xff] %vm414_vm0, %v2470_v41 }
 0x8f5   :  { %2472 = vst.msk [vmem:[#allocation8 + $0x10] sm:$0xff] %vm414_vm0, %v2469_v44 }
 0x8f6   :  { %3026 = shalt.err (!%p3023_p4)
}
 0x8f7   :  { %s3027_s26 = scalar_lea.hbm %s3563_s9, 768 }
 0x8f8   :  { %p3028_p5 = scmp.ne.s32.totalorder %s3563_s9, %s3027_s26  ;;  %p3031_p6 = scmp.lt.u32.totalorder %s3027_s26, %s3563_s9 }
 0x8fa   :  { %p3033_p7 = pnand %p3031_p6, %p3028_p5 }
 0x8fc   :  { %3036 = shalt.err (!%p3033_p7)
}
 0x8fd   :  { %s3055_s10 = smov 128   ;;  %s3056_s11 = smov 8  }
 0x8fe   :  { %2485 = dma.vmem_to_hbm [thread:$0]  %s2480_s22, 768, %s3563_s9, [#allocation9], %s3055_s10, %s3055_s10, %s3056_s11  }
 0x8ff   :  { %3049 = dma.done.wait [#allocation9], 768  }
 0x900   :  { %3050 = vsyncadd [#allocation9], 4294966528 }
 0x901   :  { %2489 = vsyncpa [#allocation9], 1 }

</bundles_post_ra>
